<compile_context>
chip_gen: v7x
topology: tpu7x:2x2x1
jax: 0.10.0
libtpu: 0.0.40
codegen_flags: <defaults>
</compile_context>

<pallas_src>
import functools

import jax
import jax.numpy as jnp
from jax.experimental import pallas as pl
from jax.experimental.pallas import tpu as pltpu


def convlstm_cell_kernel(w_ref, slab_ref, c_ref, h_out_ref, c_out_ref, *,
                         hidden_dim):
    """One (batch, spatial-tile) block per grid step.

    w_ref    : (4*hid, Kpad)      conv weight, bias folded in as a column
    slab_ref : (1, Kpad, TS)      im2col slab (row Kdim-1 == ones -> bias)
    c_ref    : (1, hid, TS)       current cell state (f32)
    outputs  : (1, hid, TS)       h_next, c_next (lane-dense, TS % 128 == 0)
    """
    # Single deep MXU matmul: conv over all K*K taps + bias in one shot.
    cc = jnp.dot(w_ref[...], slab_ref[0],
                 preferred_element_type=jnp.float32)        # (4*hid, TS) f32

    hd = hidden_dim
    # Aligned sublane slices of the gate slab; lane axis stays full width.
    i = jax.nn.sigmoid(cc[0 * hd:1 * hd, :])
    f = jax.nn.sigmoid(cc[1 * hd:2 * hd, :])
    o = jax.nn.sigmoid(cc[2 * hd:3 * hd, :])
    g = jnp.tanh(cc[3 * hd:4 * hd, :])

    c_cur = c_ref[0]                                        # (hid, TS) f32
    c_next = f * c_cur + i * g
    h_next = o * jnp.tanh(c_next)

    h_out_ref[0] = h_next.astype(h_out_ref.dtype)
    c_out_ref[0] = c_next.astype(c_out_ref.dtype)


def _spatial_tile(hw, batch):
    """Largest lane-dense tile of the flattened H*W axis.

    Prefers multiples of 128 (unmasked stores) and guarantees >= 2 grid
    programs when possible so both v7x TensorCores get work even at batch=1.
    """
    candidates = [t for t in (512, 256, 128) if hw % t == 0]
    if not candidates:
        return hw
    if batch >= 2:
        return candidates[0]
    for t in candidates:
        if hw // t >= 2:
            return t
    return candidates[-1]


def conv_lstm_cell(x, h_cur, c_cur, weight, bias, kernel_size,
                   matmul_dtype=jnp.bfloat16):
    """PyTorch-equivalent ConvLSTMCell.forward.

    x      : (B, input_dim, H, W)      NCHW (PyTorch convention)
    h_cur  : (B, hidden_dim, H, W)
    c_cur  : (B, hidden_dim, H, W)
    weight : (4*hidden_dim, input_dim+hidden_dim, K, K)   (PyTorch OIHW)
    bias   : (4*hidden_dim,)
    returns (h_next, c_next) in NCHW.
    """
    B, cin_x, H, W = x.shape
    hid = h_cur.shape[1]
    K = kernel_size
    p = K // 2
    cin = cin_x + hid
    c4 = 4 * hid
    hw = H * W
    kkc = K * K * cin

    # ---- wrapper-side layout prep (cheap XLA glue, reshapes are free) ----
    combined = jnp.concatenate([x, h_cur], axis=1)                 # (B, cin, H, W)
    padded = jnp.pad(combined, ((0, 0), (0, 0), (p, p), (p, p)))   # (B, cin, Hp, Wp)

    # im2col: slab row (dy*K + dx)*cin + c  <->  padded[:, c, y+dy, x+dx]
    taps = [padded[:, :, dy:dy + H, dx:dx + W].reshape(B, cin, hw)
            for dy in range(K) for dx in range(K)]
    slab = jnp.concatenate(taps, axis=1)                           # (B, kkc, H*W)

    # Fold the bias into the matmul (ones-row in slab, bias-column in weight)
    # and zero-pad the contraction dim to a multiple of 8 (sublane aligned).
    kdim_pad = -(-(kkc + 1) // 8) * 8
    extra = jnp.zeros((B, kdim_pad - kkc, hw), slab.dtype).at[:, 0, :].set(1.0)
    slab = jnp.concatenate([slab, extra], axis=1).astype(matmul_dtype)

    # PyTorch OIHW -> (4*hid, K*K*cin) with row order matching the slab.
    w_mat = jnp.transpose(weight, (0, 2, 3, 1)).reshape(c4, kkc)
    w_extra = jnp.zeros((c4, kdim_pad - kkc), w_mat.dtype).at[:, 0].set(bias)
    w_mat = jnp.concatenate([w_mat, w_extra], axis=1).astype(matmul_dtype)

    c_flat = c_cur.reshape(B, hid, hw)                             # free reshape

    ts = _spatial_tile(hw, B)
    grid = (B, hw // ts)

    kern = functools.partial(convlstm_cell_kernel, hidden_dim=hid)

    h_flat, c_next_flat = pl.pallas_call(
        kern,
        out_shape=(jax.ShapeDtypeStruct((B, hid, hw), jnp.float32),
                   jax.ShapeDtypeStruct((B, hid, hw), jnp.float32)),
        grid=grid,
        in_specs=[
            pl.BlockSpec((c4, kdim_pad), lambda b, s: (0, 0)),
            pl.BlockSpec((1, kdim_pad, ts), lambda b, s: (b, 0, s)),
            pl.BlockSpec((1, hid, ts), lambda b, s: (b, 0, s)),
        ],
        out_specs=(
            pl.BlockSpec((1, hid, ts), lambda b, s: (b, 0, s)),
            pl.BlockSpec((1, hid, ts), lambda b, s: (b, 0, s)),
        ),
        compiler_params=pltpu.CompilerParams(
            dimension_semantics=("parallel", "parallel")),
    )(w_mat, slab, c_flat)

    # Back to PyTorch NCHW (pure reshape, no transpose needed).
    return (h_flat.reshape(B, hid, H, W),
            c_next_flat.reshape(B, hid, H, W))


def ref_conv_lstm_cell(x, h_cur, c_cur, weight, bias, kernel_size,
                       conv_dtype=jnp.float32):
    """Pure-JAX reference mirroring the PyTorch forward.

    conv_dtype=bfloat16 reproduces the kernel's bf16 matmul inputs (with f32
    accumulation and f32 gate math) for a tight comparison.
    """
    p = kernel_size // 2
    combined = jnp.concatenate([x, h_cur], axis=1).astype(conv_dtype)
    cc = jax.lax.conv_general_dilated(
        combined, weight.astype(conv_dtype), window_strides=(1, 1),
        padding=((p, p), (p, p)),
        dimension_numbers=('NCHW', 'OIHW', 'NCHW'),
        preferred_element_type=jnp.float32)
    cc = cc + bias.astype(conv_dtype).astype(jnp.float32)[None, :, None, None]
    cc_i, cc_f, cc_o, cc_g = jnp.split(cc, 4, axis=1)
    i = jax.nn.sigmoid(cc_i)
    f = jax.nn.sigmoid(cc_f)
    o = jax.nn.sigmoid(cc_o)
    g = jnp.tanh(cc_g)
    c_next = f * c_cur + i * g
    h_next = o * jnp.tanh(c_next)
    return h_next, c_next


if __name__ == "__main__":
    # Module hyper-parameters (small, consistent with ConvLSTMCell.__init__).
    batch = 2
    input_dim = 4
    hidden_dim = 32
    kernel_size = 3
    H = W = 16

    key = jax.random.PRNGKey(0)
    kx, kh, kc, kw, kb = jax.random.split(key, 5)

    x = jax.random.normal(kx, (batch, input_dim, H, W), dtype=jnp.float32)
    h_cur = jax.random.normal(kh, (batch, hidden_dim, H, W), dtype=jnp.float32)
    c_cur = jax.random.normal(kc, (batch, hidden_dim, H, W), dtype=jnp.float32)

    # Deterministic synthetic conv parameters (shapes from nn.Conv2d).
    cin = input_dim + hidden_dim
    weight = 0.1 * jax.random.normal(
        kw, (4 * hidden_dim, cin, kernel_size, kernel_size), dtype=jnp.float32)
    bias = 0.1 * jax.random.normal(kb, (4 * hidden_dim,), dtype=jnp.float32)

    fwd = jax.jit(functools.partial(conv_lstm_cell, kernel_size=kernel_size))
    h_next, c_next = fwd(x, h_cur, c_cur, weight, bias)
    jax.block_until_ready((h_next, c_next))

    # Tight check vs a reference that uses the same bf16 matmul inputs
    # (f32 accumulation + f32 gate math, identical to the kernel).
    h_m, c_m = ref_conv_lstm_cell(x, h_cur, c_cur, weight, bias, kernel_size,
                                  conv_dtype=jnp.bfloat16)
    assert jnp.allclose(h_next, h_m, atol=2e-3, rtol=2e-3), "h_next mismatch (bf16-matched ref)"
    assert jnp.allclose(c_next, c_m, atol=2e-3, rtol=2e-3), "c_next mismatch (bf16-matched ref)"

    # Sanity check vs the exact f32 PyTorch semantics (looser: bf16 matmul
    # inputs introduce ~1e-2 absolute error at these magnitudes).
    h_f, c_f = ref_conv_lstm_cell(x, h_cur, c_cur, weight, bias, kernel_size,
                                  conv_dtype=jnp.float32)
    assert jnp.allclose(h_next, h_f, atol=5e-2), "h_next far from f32 reference"
    assert jnp.allclose(c_next, c_f, atol=5e-2), "c_next far from f32 reference"

    print("KERNEL_OK")
</pallas_src>

<mosaic_0001>
module attributes {stable_mosaic.version = 11 : i64} {
  func.func @convlstm_cell_kernel(%arg0: i32, %arg1: i32, %arg2: memref<128x328xbf16, #tpu.memory_space<vmem>>, %arg3: memref<1x328x256xbf16, #tpu.memory_space<vmem>>, %arg4: memref<1x32x256xf32, #tpu.memory_space<vmem>>, %arg5: memref<1x32x256xf32, #tpu.memory_space<vmem>>, %arg6: memref<1x32x256xf32, #tpu.memory_space<vmem>>) attributes {dimension_semantics = [#tpu.dimension_semantics<parallel>, #tpu.dimension_semantics<parallel>], iteration_bounds = array<i64: 2, 1>, scalar_prefetch = 0 : i64, scratch_operands = 0 : i64, tpu.core_type = #tpu.core_type<tc>, window_params = [{pipeline_mode = #tpu.pipeline_mode<synchronous>, transform_indices = @transform_0, window_bounds = array<i64: 128, 328>}, {transform_indices = @transform_1, window_bounds = array<i64: 1, 328, 256>}, {transform_indices = @transform_2, window_bounds = array<i64: 1, 32, 256>}, {transform_indices = @transform_3, window_bounds = array<i64: 1, 32, 256>}, {transform_indices = @transform_4, window_bounds = array<i64: 1, 32, 256>}]} {
    %c0 = arith.constant 0 : index
    %c0_0 = arith.constant 0 : index
    %0 = vector.load %arg2[%c0, %c0_0] : memref<128x328xbf16, #tpu.memory_space<vmem>>, vector<128x328xbf16>
    %c0_1 = arith.constant 0 : index
    %c0_2 = arith.constant 0 : index
    %c0_3 = arith.constant 0 : index
    %1 = vector.load %arg3[%c0_1, %c0_2, %c0_3] : memref<1x328x256xbf16, #tpu.memory_space<vmem>>, vector<1x328x256xbf16>
    %2 = vector.shape_cast %1 : vector<1x328x256xbf16> to vector<328x256xbf16>
    %cst = arith.constant dense<0.000000e+00> : vector<128x256xf32>
    %3 = tpu.matmul %0, %2, %cst {dimension_numbers = #tpu.dot_dimension_numbers<[1], [0], [0], [1], [0, 0, 1, 1], [], []>} : vector<128x328xbf16>, vector<328x256xbf16>, vector<128x256xf32> -> vector<128x256xf32>
    %4 = vector.extract_strided_slice %3 {offsets = [0, 0], sizes = [32, 256], strides = [1, 1]} : vector<128x256xf32> to vector<32x256xf32>
    %5 = arith.negf %4 : vector<32x256xf32>
    %6 = math.exp %5 : vector<32x256xf32>
    %cst_4 = arith.constant 1.000000e+00 : f32
    %7 = vector.broadcast %cst_4 : f32 to vector<32x256xf32>
    %8 = arith.addf %7, %6 : vector<32x256xf32>
    %9 = arith.divf %7, %8 : vector<32x256xf32>
    %10 = vector.extract_strided_slice %3 {offsets = [32, 0], sizes = [32, 256], strides = [1, 1]} : vector<128x256xf32> to vector<32x256xf32>
    %11 = arith.negf %10 : vector<32x256xf32>
    %12 = math.exp %11 : vector<32x256xf32>
    %cst_5 = arith.constant 1.000000e+00 : f32
    %13 = vector.broadcast %cst_5 : f32 to vector<32x256xf32>
    %14 = arith.addf %13, %12 : vector<32x256xf32>
    %15 = arith.divf %13, %14 : vector<32x256xf32>
    %16 = vector.extract_strided_slice %3 {offsets = [64, 0], sizes = [32, 256], strides = [1, 1]} : vector<128x256xf32> to vector<32x256xf32>
    %17 = arith.negf %16 : vector<32x256xf32>
    %18 = math.exp %17 : vector<32x256xf32>
    %cst_6 = arith.constant 1.000000e+00 : f32
    %19 = vector.broadcast %cst_6 : f32 to vector<32x256xf32>
    %20 = arith.addf %19, %18 : vector<32x256xf32>
    %21 = arith.divf %19, %20 : vector<32x256xf32>
    %22 = vector.extract_strided_slice %3 {offsets = [96, 0], sizes = [32, 256], strides = [1, 1]} : vector<128x256xf32> to vector<32x256xf32>
    %23 = math.tanh %22 : vector<32x256xf32>
    %c0_7 = arith.constant 0 : index
    %c0_8 = arith.constant 0 : index
    %c0_9 = arith.constant 0 : index
    %24 = vector.load %arg4[%c0_7, %c0_8, %c0_9] : memref<1x32x256xf32, #tpu.memory_space<vmem>>, vector<1x32x256xf32>
    %25 = vector.shape_cast %24 : vector<1x32x256xf32> to vector<32x256xf32>
    %26 = arith.mulf %15, %25 : vector<32x256xf32>
    %27 = arith.mulf %9, %23 : vector<32x256xf32>
    %28 = arith.addf %26, %27 : vector<32x256xf32>
    %29 = math.tanh %28 : vector<32x256xf32>
    %30 = arith.mulf %21, %29 : vector<32x256xf32>
    %c0_10 = arith.constant 0 : index
    %c0_11 = arith.constant 0 : index
    %c0_12 = arith.constant 0 : index
    %31 = vector.load %arg5[%c0_10, %c0_11, %c0_12] : memref<1x32x256xf32, #tpu.memory_space<vmem>>, vector<1x32x256xf32>
    %32 = vector.shape_cast %31 : vector<1x32x256xf32> to vector<32x256xf32>
    %33 = vector.shape_cast %30 : vector<32x256xf32> to vector<1x32x256xf32>
    tpu.vector_store %arg5[%c0_10, %c0_11, %c0_12], %33 {strides = array<i32>} : memref<1x32x256xf32, #tpu.memory_space<vmem>>, vector<1x32x256xf32>,
    %c0_13 = arith.constant 0 : index
    %c0_14 = arith.constant 0 : index
    %c0_15 = arith.constant 0 : index
    %34 = vector.load %arg6[%c0_13, %c0_14, %c0_15] : memref<1x32x256xf32, #tpu.memory_space<vmem>>, vector<1x32x256xf32>
    %35 = vector.shape_cast %34 : vector<1x32x256xf32> to vector<32x256xf32>
    %36 = vector.shape_cast %28 : vector<32x256xf32> to vector<1x32x256xf32>
    tpu.vector_store %arg6[%c0_13, %c0_14, %c0_15], %36 {strides = array<i32>} : memref<1x32x256xf32, #tpu.memory_space<vmem>>, vector<1x32x256xf32>,
    return
  }
  func.func @transform_0(%arg0: i32, %arg1: i32) -> (i32, i32) {
    %c0_i32 = arith.constant 0 : i32
    %c0_i32_0 = arith.constant 0 : i32
    %c0_i32_1 = arith.constant 0 : i32
    return %c0_i32, %c0_i32_0 : i32, i32
  }
  func.func @transform_1(%arg0: i32, %arg1: i32) -> (i32, i32, i32) {
    %c0_i32 = arith.constant 0 : i32
    %c0_i32_0 = arith.constant 0 : i32
    return %arg0, %c0_i32, %arg1 : i32, i32, i32
  }
  func.func @transform_2(%arg0: i32, %arg1: i32) -> (i32, i32, i32) {
    %c0_i32 = arith.constant 0 : i32
    %c0_i32_0 = arith.constant 0 : i32
    return %arg0, %c0_i32, %arg1 : i32, i32, i32
  }
  func.func @transform_3(%arg0: i32, %arg1: i32) -> (i32, i32, i32) {
    %c0_i32 = arith.constant 0 : i32
    %c0_i32_0 = arith.constant 0 : i32
    return %arg0, %c0_i32, %arg1 : i32, i32, i32
  }
  func.func @transform_4(%arg0: i32, %arg1: i32) -> (i32, i32, i32) {
    %c0_i32 = arith.constant 0 : i32
    %c0_i32_0 = arith.constant 0 : i32
    return %arg0, %c0_i32, %arg1 : i32, i32, i32
  }
}

</mosaic_0001>

<bundles_post_ra>
// kernel: conv_lstm_cell.1
= control target key start
LH: loop header
LB: loop body
LE: loop exit
PB: predicated region body
PF: predicated region fallthrough
CT: control target
= control target key end

     0   :  { %s1771_s15 = smov 0   ;;  %s1773_s16 = smov 0   ;;  %s2073_s0 = inlined_call_operand.vmem [shape: bf16[128,328], index: 0, kind: input, shape index: {}]   ;;  %s2074_s1 = inlined_call_operand.vmem [shape: bf16[2,328,256], index: 1, kind: input, shape index: {}]   ;;  %s2075_s2 = inlined_call_operand.vmem [shape: f32[2,32,256], index: 2, kind: input, shape index: {}]   ;;  %s2076_s3 = inlined_call_operand.vmem [shape: f32[2,32,256], index: 3, kind: output, shape index: {0}]   ;;  %s2077_s4 = inlined_call_operand.vmem [shape: f32[2,32,256], index: 4, kind: output, shape index: {1}]  }
   0x1   :  { %s1775_s17 = smov 0  }
   0x2 LB: > { %s27_s18 = sadd.s32 1, %s1739_s16  ;;  %p1329_p0 = scmp.ge.s32.totalorder %s1743_s17, 1  ;;  %s1743_s17 = sphi %s1775_s17, %s15_s17   ;;  %s1739_s16 = sphi %s1773_s16, %s2079_s16   ;;  %s1735_s15 = sphi %s1771_s15, %s2078_s15  }
   0x3   : > { %p29_p1 = scmp.ge.s32.totalorder %s27_s18, 2  ;;  %p205_p2 = scmp.lt.s32.totalorder %s1743_s17, 3 }
   0x5   : > { %s2081_s18 = smov (%p29_p1, %s27_s18), 0  ;;  %p206_p3 = pnand %p1329_p0, %p205_p2 }
   0x6   : > { %p258_p4 = scmp.lt.s32.totalorder (!%p206_p3), %s1735_s15, 1  ;;  %v1745_v0 = vmov (!%p206_p3), 0   ;;  %v1564_v1 = vld [vmem:[%s2073_s0 + $0x4] ss:$12 sps:$4 sm:$0xff] (!%p206_p3)   ;;  %vm721_vm0 = vcmask (!%p206_p3), 1043456   ;;  %vm696_vm1 = vcmask (!%p206_p3), 588800  }
   0x7   : > { %209 = sbr.rel (%p206_p3) target bundleno = 390 (0x186), region = 32  ;;  %873 = vmatprep.mubr.bf16.mxu0 (!%p206_p3), %v1745_v0  ;;  %760 = vmatprep.mubr.bf16.mxu1 (!%p206_p3), %v1564_v1  ;;  %v1561_v33 = vld [vmem:[%s2073_s0 + $0x8] ss:$12 sps:$4 sm:$0xff] (!%p206_p3)   ;;  %v1565_v38 = vld [vmem:[%s2073_s0 + $0x20] ss:$12 sps:$4 sm:$0xff] (!%p206_p3)  }
   0x8   : > { %v1569_v43 = vld [vmem:[%s2073_s0 + $0x38] ss:$12 sps:$4 sm:$0xff] (!%p206_p3)   ;;  %v1573_v48 = vld [vmem:[%s2073_s0 + $0x50] ss:$12 sps:$4 sm:$0xff] (!%p206_p3)   ;;  %v1562_v50 = vld [vmem:[%s2073_s0] ss:$12 sps:$4 sm:$0xff] (!%p206_p3)  }
   0x9   : > { %v1566_v51 = vld [vmem:[%s2073_s0 + $0x1c] ss:$12 sps:$4 sm:$0xff] (!%p206_p3)   ;;  %v1568_v53 = vld [vmem:[%s2073_s0 + $0x18] ss:$12 sps:$4 sm:$0xff] (!%p206_p3)   ;;  %v1570_v54 = vld [vmem:[%s2073_s0 + $0x34] ss:$12 sps:$4 sm:$0xff] (!%p206_p3)  }
   0xa   : > { %v1577_v52 = vld [vmem:[%s2073_s0 + $0x68] ss:$12 sps:$4 sm:$0xff] (!%p206_p3)   ;;  %v1581_v55 = vld [vmem:[%s2073_s0 + $0x80] ss:$12 sps:$4 sm:$0xff] (!%p206_p3)   ;;  %v1572_v56 = vld [vmem:[%s2073_s0 + $0x30] ss:$12 sps:$4 sm:$0xff] (!%p206_p3)  }
   0xb   : > { %v1574_v57 = vld [vmem:[%s2073_s0 + $0x4c] ss:$12 sps:$4 sm:$0xff] (!%p206_p3)   ;;  %v1576_v59 = vld [vmem:[%s2073_s0 + $0x48] ss:$12 sps:$4 sm:$0xff] (!%p206_p3)   ;;  %v1578_v60 = vld [vmem:[%s2073_s0 + $0x64] ss:$12 sps:$4 sm:$0xff] (!%p206_p3)  }
   0xc   : > { %v1585_v58 = vld [vmem:[%s2073_s0 + $0x98] ss:$12 sps:$4 sm:$0xff] (!%p206_p3)   ;;  %v1589_v61 = vld [vmem:[%s2073_s0 + $0xb0] ss:$12 sps:$4 sm:$0xff] (!%p206_p3)   ;;  %v1580_v62 = vld [vmem:[%s2073_s0 + $0x60] ss:$12 sps:$4 sm:$0xff] (!%p206_p3)  }
   0xd   : > { %v1582_v63 = vld [vmem:[%s2073_s0 + $0x7c] ss:$12 sps:$4 sm:$0xff] (!%p206_p3)   ;;  %v1586_v1 = vld [vmem:[%s2073_s0 + $0x94] ss:$12 sps:$4 sm:$0xff] (!%p206_p3)  }
   0xe   : > { %s2083_s15 = smov (!%p258_p4, %s1735_s15), 1 }
   0xf   : > { %s1473_s21 = smul.u32 328, %s2083_s15  ;;  %s1999_s27 = sshll.u32 %s2083_s15, 6 }
  0x10   : > { %s2005_s30 = scalar_lea.vmem %s2075_s2, %s1999_s27  ;;  %s2021_s6 = scalar_lea.vmem %s2077_s4, %s1999_s27 }
  0x11   : > { %s1799_s24 = scalar_lea.vmem %s2074_s1, %s1473_s21  ;;  %s2048_s9 = scalar_lea.vmem %s2076_s3, %s1999_s27 }
  0x12   : > { %v1499_v2 = vld [vmem:[%s1799_s24 + $0x4] ss:$8 sps:$4 sm:$0xff]   ;;  %v1501_v3 = vld [vmem:[%s1799_s24] ss:$8 sps:$4 sm:$0xff]   ;;  %v1502_v4 = vld [vmem:[%s1799_s24 + $0x14] ss:$8 sps:$4 sm:$0xff]  }
  0x13   : > { %728 = vmatprep.subr.bf16.mxu1 %v1499_v2  ;;  %v1504_v5 = vld [vmem:[%s1799_s24 + $0x10] ss:$8 sps:$4 sm:$0xff]   ;;  %v1505_v6 = vld [vmem:[%s1799_s24 + $0x24] ss:$8 sps:$4 sm:$0xff]   ;;  %v1507_v7 = vld [vmem:[%s1799_s24 + $0x20] ss:$8 sps:$4 sm:$0xff]  }
  0x14   : > { %729 = vmatpush1.bf16.msra.mxu1 %v1501_v3  ;;  %v1508_v8 = vld [vmem:[%s1799_s24 + $0x34] ss:$8 sps:$4 sm:$0xff]   ;;  %v1510_v9 = vld [vmem:[%s1799_s24 + $0x30] ss:$8 sps:$4 sm:$0xff]   ;;  %v1511_v10 = vld [vmem:[%s1799_s24 + $0x44] ss:$8 sps:$4 sm:$0xff]  }
  0x15   : > { %730 = vmatprep.subr.bf16.mxu1 %v1502_v4  ;;  %v1513_v11 = vld [vmem:[%s1799_s24 + $0x40] ss:$8 sps:$4 sm:$0xff]   ;;  %v1532_v12 = vld [vmem:[%s1799_s24 + $0x104] ss:$8 sps:$4 sm:$0xff]   ;;  %v1514_v14 = vld [vmem:[%s1799_s24 + $0x54] ss:$8 sps:$4 sm:$0xff]  }
  0x16   : > { %v1534_v13 = vld [vmem:[%s1799_s24 + $0x100] ss:$8 sps:$4 sm:$0xff]   ;;  %841 = vmatprep.subr.bf16.mxu0 %v1532_v12  ;;  %v1538_v15 = vld [vmem:[%s1799_s24 + $0x114] ss:$8 sps:$4 sm:$0xff]   ;;  %v1540_v16 = vld [vmem:[%s1799_s24 + $0x110] ss:$8 sps:$4 sm:$0xff]  }
  0x17   : > { %842 = vmatpush1.bf16.msra.mxu0 %v1534_v13  ;;  %v1516_v17 = vld [vmem:[%s1799_s24 + $0x50] ss:$8 sps:$4 sm:$0xff]   ;;  %v1517_v18 = vld [vmem:[%s1799_s24 + $0x64] ss:$8 sps:$4 sm:$0xff]   ;;  %v1546_v20 = vld [vmem:[%s1799_s24 + $0x120] ss:$8 sps:$4 sm:$0xff]  }
  0x18   : > { %731 = vmatpush1.bf16.msra.mxu1 %v1504_v5  ;;  %843 = vmatprep.subr.bf16.mxu0 %v1538_v15  ;;  %v1544_v19 = vld [vmem:[%s1799_s24 + $0x124] ss:$8 sps:$4 sm:$0xff]   ;;  %v1519_v21 = vld [vmem:[%s1799_s24 + $0x60] ss:$8 sps:$4 sm:$0xff]   ;;  %v1550_v22 = vld [vmem:[%s1799_s24 + $0x134] ss:$8 sps:$4 sm:$0xff]  }
  0x19   : > { %732 = vmatprep.subr.bf16.mxu1 %v1505_v6  ;;  %v1520_v23 = vld [vmem:[%s1799_s24 + $0x74] ss:$8 sps:$4 sm:$0xff]   ;;  %v370_v24 = vld [vmem:[%s1799_s24 + $0x140] sm:$0xff]  ;;  %v1552_v25 = vld [vmem:[%s1799_s24 + $0x130] ss:$8 sps:$4 sm:$0xff]  }
  0x1a   : > { %v1522_v26 = vld [vmem:[%s1799_s24 + $0x70] ss:$8 sps:$4 sm:$0xff]   ;;  %v1402_v27 = vcombine.high %v370_v24, %v370_v24  ;;  %v1401_v28 = vcombine.low %v370_v24, %v370_v24  ;;  %v1523_v29 = vld [vmem:[%s1799_s24 + $0x84] ss:$8 sps:$4 sm:$0xff]   ;;  %v1525_v30 = vld [vmem:[%s1799_s24 + $0x80] ss:$8 sps:$4 sm:$0xff]  }
  0x1b   : > { %844 = vmatpush1.bf16.msra.mxu0 %v1540_v16  ;;  %v1526_v32 = vld [vmem:[%s1799_s24 + $0x94] ss:$8 sps:$4 sm:$0xff]   ;;  %v1528_v34 = vld [vmem:[%s1799_s24 + $0x90] ss:$8 sps:$4 sm:$0xff]   ;;  %v1529_v35 = vld [vmem:[%s1799_s24 + $0xa4] ss:$8 sps:$4 sm:$0xff]  }
  0x1c   : > { %733 = vmatpush1.bf16.msra.mxu1 %v1507_v7  ;;  %845 = vmatprep.subr.bf16.mxu0 %v1544_v19  ;;  %v723_v31 = vsel %vm721_vm0, %v1401_v28, 0  ;;  %v1531_v36 = vld [vmem:[%s1799_s24 + $0xa0] ss:$8 sps:$4 sm:$0xff]   ;;  %v1535_v37 = vld [vmem:[%s1799_s24 + $0xb4] ss:$8 sps:$4 sm:$0xff]  }
  0x1d   : > { %734 = vmatprep.subr.bf16.mxu1 %v1508_v8  ;;  %v1537_v39 = vld [vmem:[%s1799_s24 + $0xb0] ss:$8 sps:$4 sm:$0xff]   ;;  %v1541_v40 = vld [vmem:[%s1799_s24 + $0xc4] ss:$8 sps:$4 sm:$0xff]   ;;  %v1543_v41 = vld [vmem:[%s1799_s24 + $0xc0] ss:$8 sps:$4 sm:$0xff]  }
  0x1e   : > { %v1547_v42 = vld [vmem:[%s1799_s24 + $0xd4] ss:$8 sps:$4 sm:$0xff]   ;;  %v1549_v44 = vld [vmem:[%s1799_s24 + $0xd0] ss:$8 sps:$4 sm:$0xff]   ;;  %v1553_v45 = vld [vmem:[%s1799_s24 + $0xe4] ss:$8 sps:$4 sm:$0xff]  }
  0x1f   : > { %846 = vmatpush1.bf16.msra.mxu0 %v1546_v20  ;;  %v1555_v46 = vld [vmem:[%s1799_s24 + $0xe0] ss:$8 sps:$4 sm:$0xff]   ;;  %v1558_v47 = vld [vmem:[%s1799_s24 + $0xf4] ss:$8 sps:$4 sm:$0xff]   ;;  %v1560_v49 = vld [vmem:[%s1799_s24 + $0xf0] ss:$8 sps:$4 sm:$0xff]  }
  0x20   : > { %735 = vmatpush1.bf16.msra.mxu1 %v1510_v9  ;;  %847 = vmatprep.subr.bf16.mxu0 %v1550_v22  ;;  %v1588_v2 = vld [vmem:[%s2073_s0 + $0x90] ss:$12 sps:$4 sm:$0xff]   ;;  %v1590_v3 = vld [vmem:[%s2073_s0 + $0xac] ss:$12 sps:$4 sm:$0xff]   ;;  %v1592_v4 = vld [vmem:[%s2073_s0 + $0xa8] ss:$12 sps:$4 sm:$0xff]  }
  0x21   : > { %736 = vmatprep.subr.bf16.mxu1 %v1511_v10 }
  0x23   : > { %848 = vmatpush1.bf16.msra.mxu0 %v1552_v25 }
  0x24   : > { %737 = vmatpush1.bf16.msra.mxu1 %v1513_v11  ;;  %1403 = vmatprep.subr.msk.bf16.mxu0 %vm721_vm0, %v1402_v27 }
  0x25   : > { %738 = vmatprep.subr.bf16.mxu1 %v1514_v14 }
  0x27   : > { %850 = vmatpush1.bf16.msra.mxu0 %v723_v31 }
  0x28   : > { %739 = vmatpush1.bf16.msra.mxu1 %v1516_v17 }
  0x29   : > { %740 = vmatprep.subr.bf16.mxu1 %v1517_v18 }
  0x2a   : > { %1404 = vmatmul.mubr.msk.bf16.vlgmr.msra.gmra.mrb[0].mxu0 %vm696_vm1, %v1561_v33 }
  0x2b   : > { %883 = vmatprep.mubr.bf16.mxu0 %v1745_v0 }
  0x2c   : > { %741 = vmatpush1.bf16.msra.mxu1 %v1519_v21 }
  0x2d   : > { %742 = vmatprep.subr.bf16.mxu1 %v1520_v23 }
  0x30   : > { %743 = vmatpush1.bf16.msra.mxu1 %v1522_v26 }
  0x31   : > { %744 = vmatprep.subr.bf16.mxu1 %v1523_v29 }
  0x32   : > { %1405 = vmatmul.mubr.msk.bf16.gmra.mrb[4].mxu0 %vm696_vm1, %v1565_v38 }
  0x33   : > { %893 = vmatprep.mubr.bf16.mxu0 %v1745_v0 }
  0x34   : > { %745 = vmatpush1.bf16.msra.mxu1 %v1525_v30 }
  0x35   : > { %746 = vmatprep.subr.bf16.mxu1 %v1526_v32 }
  0x38   : > { %747 = vmatpush1.bf16.msra.mxu1 %v1528_v34 }
  0x39   : > { %748 = vmatprep.subr.bf16.mxu1 %v1529_v35 }
  0x3a   : > { %1406 = vmatmul.mubr.msk.bf16.gmra.mrb[8].mxu0 %vm696_vm1, %v1569_v43 }
  0x3b   : > { %903 = vmatprep.mubr.bf16.mxu0 %v1745_v0 }
  0x3c   : > { %749 = vmatpush1.bf16.msra.mxu1 %v1531_v36 }
  0x3d   : > { %750 = vmatprep.subr.bf16.mxu1 %v1535_v37 }
  0x40   : > { %751 = vmatpush1.bf16.msra.mxu1 %v1537_v39 }
  0x41   : > { %752 = vmatprep.subr.bf16.mxu1 %v1541_v40 }
  0x42   : > { %1407 = vmatmul.mubr.msk.bf16.gmra.mrb[12].mxu0 %vm696_vm1, %v1573_v48 }
  0x43   : > { %913 = vmatprep.mubr.bf16.mxu0 %v1745_v0 }
  0x44   : > { %753 = vmatpush1.bf16.msra.mxu1 %v1543_v41 }
  0x45   : > { %754 = vmatprep.subr.bf16.mxu1 %v1547_v42 }
  0x48   : > { %755 = vmatpush1.bf16.msra.mxu1 %v1549_v44 }
  0x49   : > { %756 = vmatprep.subr.bf16.mxu1 %v1553_v45 }
  0x4a   : > { %1408 = vmatmul.mubr.msk.bf16.gmra.mrb[16].mxu0 %vm696_vm1, %v1577_v52 }
  0x4b   : > { %923 = vmatprep.mubr.bf16.mxu0 %v1745_v0 }
  0x4c   : > { %757 = vmatpush1.bf16.msra.mxu1 %v1555_v46 }
  0x4d   : > { %758 = vmatprep.subr.bf16.mxu1 %v1558_v47 }
  0x50   : > { %759 = vmatpush1.bf16.msra.mxu1 %v1560_v49 }
  0x52   : > { %1409 = vmatmul.mubr.msk.bf16.gmra.mrb[20].mxu0 %vm696_vm1, %v1581_v55 }
  0x53   : > { %761 = vmatmul.mubr.bf16.vlgmr.msra.gmra.mrb[0].mxu1 %v1562_v50  ;;  %933 = vmatprep.mubr.bf16.mxu0 %v1745_v0 }
  0x54   : > { %770 = vmatprep.mubr.bf16.mxu1 %v1566_v51 }
  0x5a   : > { %1410 = vmatmul.mubr.msk.bf16.gmra.mrb[24].mxu0 %vm696_vm1, %v1585_v58 }
  0x5b   : > { %771 = vmatmul.mubr.bf16.gmra.mrb[4].mxu1 %v1568_v53  ;;  %943 = vmatprep.mubr.bf16.mxu0 %v1745_v0  ;;  %v1584_v0 = vld [vmem:[%s2073_s0 + $0x78] ss:$12 sps:$4 sm:$0xff]  }
  0x5c   : > { %780 = vmatprep.mubr.bf16.mxu1 %v1570_v54 }
  0x62   : > { %1411 = vmatmul.mubr.msk.bf16.gmra.mrb[28].mxu0 %vm696_vm1, %v1589_v61 }
  0x63   : > { %781 = vmatmul.mubr.bf16.gmra.mrb[8].mxu1 %v1572_v56 }
  0x64   : > { %790 = vmatprep.mubr.bf16.mxu1 %v1574_v57 }
  0x6b   : > { %791 = vmatmul.mubr.bf16.gmra.mrb[12].mxu1 %v1576_v59 }
  0x6c   : > { %800 = vmatprep.mubr.bf16.mxu1 %v1578_v60 }
  0x73   : > { %801 = vmatmul.mubr.bf16.gmra.mrb[16].mxu1 %v1580_v62 }
  0x74   : > { %810 = vmatprep.mubr.bf16.mxu1 %v1582_v63 }
  0x7b   : > { %811 = vmatmul.mubr.bf16.gmra.mrb[20].mxu1 %v1584_v0 }
  0x7c   : > { %820 = vmatprep.mubr.bf16.mxu1 %v1586_v1 }
  0x83   : > { %821 = vmatmul.mubr.bf16.gmra.mrb[24].mxu1 %v1588_v2 }
  0x84   : > { %830 = vmatprep.mubr.bf16.mxu1 %v1590_v3 }
  0x8b   : > { %831 = vmatmul.mubr.bf16.gmra.mrb[28].mxu1 %v1592_v4 }
  0xfd   : > { %v875_v5 = vpop.f32.mrb[0].mxu0 }
  0xfe   : > { %v877_v6 = vpop.f32.mrb[1].mxu0 }
  0xff   : > { %v879_v7 = vpop.f32.mrb[2].mxu0 }
 0x100   : > { %v881_v8 = vpop.f32.mrb[3].mxu0 }
 0x105   : > { %v885_v9 = vpop.f32.mrb[4].mxu0 }
 0x106   : > { %v887_v10 = vpop.f32.mrb[5].mxu0 }
 0x107   : > { %v889_v11 = vpop.f32.mrb[6].mxu0 }
 0x108   : > { %v891_v12 = vpop.f32.mrb[7].mxu0 }
 0x10d   : > { %v895_v13 = vpop.f32.mrb[8].mxu0 }
 0x10e   : > { %v897_v14 = vpop.f32.mrb[9].mxu0 }
 0x10f   : > { %v899_v15 = vpop.f32.mrb[10].mxu0 }
 0x110   : > { %v901_v16 = vpop.f32.mrb[11].mxu0 }
 0x115   : > { %v1926_v17 = vpop.f32.mrb[12].mxu0 }
 0x116   : > { %v1928_v18 = vpop.f32.mrb[13].mxu0 }
 0x117   : > { %v1930_v19 = vpop.f32.mrb[14].mxu0 }
 0x118   : > { %v1932_v20 = vpop.f32.mrb[15].mxu0 }
 0x11d   : > { %v1934_v28 = vpop.f32.mrb[16].mxu0 }
 0x11e   : > { %v1936_v30 = vpop.f32.mrb[17].mxu0 }
 0x11f   : > { %v1938_v31 = vpop.f32.mrb[18].mxu0 }
 0x120   : > { %v1940_v32 = vpop.f32.mrb[19].mxu0 }
 0x125   : > { %v1942_v43 = vpop.f32.mrb[20].mxu0 }
 0x126   : > { %v762_v21 = vpop.f32.mrb[0].mxu1  ;;  %v1944_v45 = vpop.f32.mrb[21].mxu0 }
 0x127   : > { %v876_v22 = vadd.f32 %v875_v5, %v762_v21  ;;  %v764_v23 = vpop.f32.mrb[1].mxu1  ;;  %v1946_v47 = vpop.f32.mrb[22].mxu0 }
 0x128   : > { %v878_v24 = vadd.f32 %v877_v6, %v764_v23  ;;  %v766_v25 = vpop.f32.mrb[2].mxu1  ;;  %v1948_v48 = vpop.f32.mrb[23].mxu0 }
 0x129   : > { %v880_v26 = vadd.f32 %v879_v7, %v766_v25  ;;  %v768_v27 = vpop.f32.mrb[3].mxu1  ;;  %v1412_v33 = vmul.f32 -1.442695, %v876_v22 }
 0x12a   : > { %v882_v29 = vadd.f32 %v881_v8, %v768_v27  ;;  %v1413_v35 = vmul.f32 -1.442695, %v878_v24 }
 0x12b   : > { %v1414_v38 = vmul.f32 -1.442695, %v880_v26  ;;  %1593 = vpow2.f32 %v1412_v33 }
 0x12c   : > { %1595 = vpow2.f32 %v1413_v35  ;;  %v1415_v46 = vmul.f32 -1.442695, %v882_v29 }
 0x12d   : > { %1597 = vpow2.f32 %v1414_v38  ;;  %v1950_v60 = vpop.f32.mrb[24].mxu0 }
 0x12e   : > { %v772_v34 = vpop.f32.mrb[4].mxu1  ;;  %1599 = vpow2.f32 %v1415_v46  ;;  %v1952_v63 = vpop.f32.mrb[25].mxu0 }
 0x12f   : > { %v886_v36 = vadd.f32 %v885_v9, %v772_v34  ;;  %v774_v37 = vpop.f32.mrb[5].mxu1  ;;  %v1954_v1 = vpop.f32.mrb[26].mxu0 }
 0x130   : > { %v888_v39 = vadd.f32 %v887_v10, %v774_v37  ;;  %v776_v40 = vpop.f32.mrb[6].mxu1  ;;  %v1956_v4 = vpop.f32.mrb[27].mxu0 }
 0x131   : > { %v890_v41 = vadd.f32 %v889_v11, %v776_v40  ;;  %v778_v42 = vpop.f32.mrb[7].mxu1  ;;  %v1416_v49 = vmul.f32 -1.442695, %v886_v36 }
 0x132   : > { %v892_v44 = vadd.f32 %v891_v12, %v778_v42  ;;  %v1417_v51 = vmul.f32 -1.442695, %v888_v39 }
 0x133   : > { %v1418_v54 = vmul.f32 -1.442695, %v890_v41  ;;  %1601 = vpow2.f32 %v1416_v49 }
 0x134   : > { %v1419_v57 = vmul.f32 -1.442695, %v892_v44  ;;  %1603 = vpow2.f32 %v1417_v51 }
 0x135   : > { %v1594_v2 = vpop.eup %1593  ;;  %1605 = vpow2.f32 %v1418_v54  ;;  %v1961_v23 = vpop.f32.mrb[28].mxu0 }
 0x136   : > { %v782_v50 = vpop.f32.mrb[8].mxu1  ;;  %v1596_v5 = vpop.eup %1595  ;;  %1607 = vpow2.f32 %v1419_v57  ;;  %v978_v9 = vadd.f32 1.0, %v1594_v2 }
 0x137   : > { %v896_v52 = vadd.f32 %v895_v13, %v782_v50  ;;  %v784_v53 = vpop.f32.mrb[9].mxu1  ;;  %v1598_v7 = vpop.eup %1597  ;;  %v979_v12 = vadd.f32 1.0, %v1596_v5 }
 0x138   : > { %v898_v55 = vadd.f32 %v897_v14, %v784_v53  ;;  %v786_v56 = vpop.f32.mrb[10].mxu1  ;;  %v1964_v26 = vpop.f32.mrb[29].mxu0 }
 0x139   : > { %v900_v58 = vadd.f32 %v899_v15, %v786_v56  ;;  %v788_v59 = vpop.f32.mrb[11].mxu1  ;;  %v1420_v61 = vmul.f32 -1.442695, %v896_v52  ;;  %v1600_v15 = vpop.eup %1599 }
 0x13a   : > { %v902_v62 = vadd.f32 %v901_v16, %v788_v59  ;;  %v1421_v0 = vmul.f32 -1.442695, %v898_v55  ;;  %v980_v16 = vadd.f32 1.0, %v1598_v7  ;;  %v1966_v29 = vpop.f32.mrb[30].mxu0 }
 0x13b   : > { %v1422_v3 = vmul.f32 -1.442695, %v900_v58  ;;  %1609 = vpow2.f32 %v1420_v61  ;;  %v1968_v33 = vpop.f32.mrb[31].mxu0 }
 0x13c   : > { %v1423_v6 = vmul.f32 -1.442695, %v902_v62  ;;  %1611 = vpow2.f32 %v1421_v0 }
 0x13d   : > { %1613 = vpow2.f32 %v1422_v3 }
 0x13e   : > { %v792_v8 = vpop.f32.mrb[12].mxu1  ;;  %1615 = vpow2.f32 %v1423_v6 }
 0x13f   : > { %v906_v10 = vadd.f32 %v1926_v17, %v792_v8  ;;  %v794_v11 = vpop.f32.mrb[13].mxu1  ;;  %v1602_v17 = vpop.eup %1601  ;;  %1617 = vrcp.f32 %v978_v9 }
 0x140   : > { %v908_v13 = vadd.f32 %v1928_v18, %v794_v11  ;;  %v796_v14 = vpop.f32.mrb[14].mxu1  ;;  %1619 = vrcp.f32 %v979_v12  ;;  %v981_v18 = vadd.f32 1.0, %v1600_v15  ;;  %v1604_v34 = vpop.eup %1603  ;;  %v982_v36 = vadd.f32 1.0, %v1602_v17 }
 0x141   : > { %v910_v21 = vadd.f32 %v1930_v19, %v796_v14  ;;  %v798_v22 = vpop.f32.mrb[15].mxu1  ;;  %v1424_v24 = vmul.f32 -1.442695, %v906_v10  ;;  %1621 = vrcp.f32 %v980_v16  ;;  %v1606_v35 = vpop.eup %1605  ;;  %v983_v42 = vadd.f32 1.0, %v1604_v34 }
 0x142   : > { %v912_v25 = vadd.f32 %v1932_v20, %v798_v22  ;;  %v1425_v27 = vmul.f32 -1.442695, %v908_v13  ;;  %v1608_v38 = vpop.eup %1607  ;;  %v984_v50 = vadd.f32 1.0, %v1606_v35 }
 0x143   : > { %v1426_v19 = vmul.f32 -1.442695, %v910_v21  ;;  %1623 = vpow2.f32 %v1424_v24  ;;  %v985_v54 = vadd.f32 1.0, %v1608_v38 }
 0x144   : > { %1625 = vpow2.f32 %v1425_v27  ;;  %v1427_v20 = vmul.f32 -1.442695, %v912_v25 }
 0x145   : > { %v1610_v41 = vpop.eup %1609  ;;  %1627 = vrcp.f32 %v981_v18 }
 0x146   : > { %v802_v37 = vpop.f32.mrb[16].mxu1  ;;  %v1612_v49 = vpop.eup %1611  ;;  %1629 = vpow2.f32 %v1426_v19 }
 0x147   : > { %v916_v39 = vadd.f32 %v1934_v28, %v802_v37  ;;  %v804_v40 = vpop.f32.mrb[17].mxu1  ;;  %v1614_v53 = vpop.eup %1613  ;;  %1631 = vrcp.f32 %v982_v36  ;;  %v1026_v28 = vadd.f32 1.0, %v1610_v41  ;;  %v1027_v57 = vadd.f32 1.0, %v1612_v49 }
 0x148   : > { %v918_v44 = vadd.f32 %v1936_v30, %v804_v40  ;;  %v806_v46 = vpop.f32.mrb[18].mxu1  ;;  %v1616_v56 = vpop.eup %1615  ;;  %1633 = vpow2.f32 %v1427_v20  ;;  %v1028_v30 = vadd.f32 1.0, %v1614_v53 }
 0x149   : > { %v920_v51 = vadd.f32 %v1938_v31, %v806_v46  ;;  %v808_v52 = vpop.f32.mrb[19].mxu1  ;;  %1635 = vrcp.f32 %v983_v42  ;;  %v1974_v58 = vpop.eup %1617  ;;  %v1029_v61 = vadd.f32 1.0, %v1616_v56  ;;  %v1428_v0 = vmul.f32 -1.442695, %v916_v39  ;;  %v1106_v56 = vld [vmem:[%s2005_s30] sm:$0xff] }
 0x14a   : > { %v922_v55 = vadd.f32 %v1940_v32, %v808_v52  ;;  %1637 = vrcp.f32 %v984_v50  ;;  %v1976_v59 = vpop.eup %1619  ;;  %v1429_v5 = vmul.f32 -1.442695, %v918_v44 }
 0x14b   : > { %1639 = vrcp.f32 %v985_v54  ;;  %v1978_v62 = vpop.eup %1621  ;;  %v1430_v9 = vmul.f32 -1.442695, %v920_v51 }
 0x14c   : > { %1641 = vrcp.f32 %v1026_v28  ;;  %v1431_v13 = vmul.f32 -1.442695, %v922_v55 }
 0x14d   : > { %v1624_v3 = vpop.eup %1623  ;;  %1643 = vrcp.f32 %v1027_v57 }
 0x14e   : > { %v812_v31 = vpop.f32.mrb[20].mxu1  ;;  %v1626_v8 = vpop.eup %1625  ;;  %1645 = vrcp.f32 %v1028_v30  ;;  %v1030_v15 = vadd.f32 1.0, %v1624_v3 }
 0x14f   : > { %v926_v32 = vadd.f32 %v1942_v43, %v812_v31  ;;  %v814_v2 = vpop.f32.mrb[21].mxu1  ;;  %v1983_v12 = vpop.eup %1627  ;;  %1647 = vrcp.f32 %v1029_v61  ;;  %v1031_v21 = vadd.f32 1.0, %v1626_v8 }
 0x150   : > { %v928_v6 = vadd.f32 %v1944_v45, %v814_v2  ;;  %v816_v7 = vpop.f32.mrb[22].mxu1  ;;  %v1630_v43 = vpop.eup %1629  ;;  %1649 = vpow2.f32 %v1428_v0 }
 0x151   : > { %v930_v10 = vadd.f32 %v1946_v47, %v816_v7  ;;  %v818_v11 = vpop.f32.mrb[23].mxu1  ;;  %v1986_v16 = vpop.eup %1631  ;;  %1651 = vpow2.f32 %v1429_v5  ;;  %v1032_v24 = vadd.f32 1.0, %v1630_v43  ;;  %v1432_v17 = vmul.f32 -1.442695, %v926_v32  ;;  %v1108_v7 = vld [vmem:[%s2005_s30 + $0x10] sm:$0xff] }
 0x152   : > { %v932_v14 = vadd.f32 %v1948_v48, %v818_v11  ;;  %v1634_v45 = vpop.eup %1633  ;;  %1653 = vpow2.f32 %v1430_v9  ;;  %v1433_v37 = vmul.f32 -1.442695, %v928_v6  ;;  %v1109_v9 = vld [vmem:[%s2005_s30 + $0x18] sm:$0xff] }
 0x153   : > { %v1988_v22 = vpop.eup %1635  ;;  %1655 = vpow2.f32 %v1431_v13  ;;  %v1033_v34 = vadd.f32 1.0, %v1634_v45 }
 0x154   : > { %v1990_v25 = vpop.eup %1637  ;;  %1657 = vrcp.f32 %v1030_v15  ;;  %v1435_v46 = vmul.f32 -1.442695, %v932_v14  ;;  %v1110_v14 = vld [vmem:[%s2005_s30 + $0x20] sm:$0xff] }
 0x155   : > { %v1993_v18 = vpop.eup %1639  ;;  %1659 = vrcp.f32 %v1031_v21 }
 0x156   : > { %v822_v47 = vpop.f32.mrb[24].mxu1  ;;  %v1642_v36 = vpop.eup %1641 }
 0x157   : > { %v936_v48 = vadd.f32 %v1950_v60, %v822_v47  ;;  %v824_v27 = vpop.f32.mrb[25].mxu1  ;;  %v1644_v39 = vpop.eup %1643 }
 0x158   : > { %v938_v19 = vadd.f32 %v1952_v63, %v824_v27  ;;  %v826_v35 = vpop.f32.mrb[26].mxu1  ;;  %v1646_v60 = vpop.eup %1645 }
 0x159   : > { %1661 = vtanh.f32 %v936_v48  ;;  %v940_v38 = vadd.f32 %v1954_v1, %v826_v35  ;;  %v828_v20 = vpop.f32.mrb[27].mxu1  ;;  %v1648_v41 = vpop.eup %1647  ;;  %v1434_v1 = vmul.f32 -1.442695, %v930_v10  ;;  %v1116_v21 = vmul.f32 %v1646_v60, %v1108_v7 }
 0x15a   : > { %1663 = vrcp.f32 %v1032_v24  ;;  %v942_v40 = vadd.f32 %v1956_v4, %v828_v20  ;;  %v1650_v42 = vpop.eup %1649  ;;  %v1117_v47 = vmul.f32 %v1648_v41, %v1109_v9  ;;  %v1112_v20 = vld [vmem:[%s2005_s30 + $0x30] sm:$0xff] }
 0x15b   : > { %1665 = vpow2.f32 %v1432_v17  ;;  %v1652_v63 = vpop.eup %1651  ;;  %v1074_v52 = vadd.f32 1.0, %v1650_v42  ;;  %v1113_v42 = vld [vmem:[%s2005_s30 + $0x38] sm:$0xff] }
 0x15c   : > { %1667 = vrcp.f32 %v1033_v34  ;;  %v1654_v4 = vpop.eup %1653  ;;  %v1075_v28 = vadd.f32 1.0, %v1652_v63 }
 0x15d   : > { %1669 = vpow2.f32 %v1433_v37  ;;  %v1656_v51 = vpop.eup %1655  ;;  %v1076_v3 = vadd.f32 1.0, %v1654_v4  ;;  %v1111_v37 = vld [vmem:[%s2005_s30 + $0x28] sm:$0xff] }
 0x15e   : > { %1671 = vtanh.f32 %v938_v19  ;;  %v832_v44 = vpop.f32.mrb[28].mxu1  ;;  %v1658_v55 = vpop.eup %1657  ;;  %v1077_v8 = vadd.f32 1.0, %v1656_v51 }
 0x15f   : > { %1673 = vtanh.f32 %v940_v38  ;;  %v946_v49 = vadd.f32 %v1961_v23, %v832_v44  ;;  %v834_v50 = vpop.f32.mrb[29].mxu1  ;;  %v2011_v61 = vpop.eup %1659  ;;  %v1118_v34 = vmul.f32 %v1658_v55, %v1110_v14 }
 0x160   : > { %1675 = vtanh.f32 %v942_v40  ;;  %v948_v53 = vadd.f32 %v1964_v26, %v834_v50  ;;  %v836_v54 = vpop.f32.mrb[30].mxu1  ;;  %v1114_v26 = vmul.f32 %v1642_v36, %v1106_v56  ;;  %v1119_v41 = vmul.f32 %v2011_v61, %v1111_v37 }
 0x161   : > { %1677 = vtanh.f32 %v946_v49  ;;  %v950_v57 = vadd.f32 %v1966_v29, %v836_v54  ;;  %v838_v30 = vpop.f32.mrb[31].mxu1 }
 0x162   : > { %1679 = vpow2.f32 %v1434_v1  ;;  %v952_v23 = vadd.f32 %v1968_v33, %v838_v30  ;;  %v1107_v33 = vld [vmem:[%s2005_s30 + $0x8] sm:$0xff] }
 0x163   : > { %v1662_v31 = vpop.eup %1661  ;;  %1681 = vpow2.f32 %v1435_v46  ;;  %v1115_v13 = vmul.f32 %v1644_v39, %v1107_v33 }
 0x164   : > { %v2014_v0 = vpop.eup %1663  ;;  %1683 = vrcp.f32 %v1074_v52  ;;  %v1122_v32 = vmul.f32 %v1662_v31, %v1974_v58 }
 0x165   : > { %v1666_v2 = vpop.eup %1665  ;;  %1685 = vrcp.f32 %v1075_v28  ;;  %v1120_v44 = vmul.f32 %v2014_v0, %v1112_v20 }
 0x166   : > { %v2023_v29 = vpop.eup %1667  ;;  %v1130_v5 = vadd.f32 %v1122_v32, %v1114_v26  ;;  %1687 = vtanh.f32 %v948_v53  ;;  %v1078_v10 = vadd.f32 1.0, %v1666_v2 }
 0x167   : > { %v1670_v6 = vpop.eup %1669  ;;  %1689 = vtanh.f32 %v950_v57 }
 0x168   : > { %v1672_v58 = vpop.eup %1671  ;;  %1691 = vtanh.f32 %v1130_v5  ;;  %1162 = vst [vmem:[%s2021_s6] sm:$0xff] %v1130_v5  ;;  %v1079_v39 = vadd.f32 1.0, %v1670_v6 }
 0x169   : > { %v1674_v11 = vpop.eup %1673  ;;  %v1123_v43 = vmul.f32 %v1672_v58, %v1976_v59  ;;  %1693 = vtanh.f32 %v952_v23 }
 0x16a   : > { %v1676_v15 = vpop.eup %1675  ;;  %1695 = vrcp.f32 %v1076_v3  ;;  %v1124_v45 = vmul.f32 %v1674_v11, %v1978_v62 }
 0x16b   : > { %v1678_v24 = vpop.eup %1677  ;;  %1697 = vrcp.f32 %v1077_v8  ;;  %v1131_v17 = vadd.f32 %v1123_v43, %v1115_v13  ;;  %v1125_v48 = vmul.f32 %v1676_v15, %v1983_v12 }
 0x16c   : > { %v1680_v27 = vpop.eup %1679  ;;  %1699 = vrcp.f32 %v1078_v10  ;;  %v1132_v59 = vadd.f32 %v1124_v45, %v1116_v21  ;;  %v1126_v19 = vmul.f32 %v1678_v24, %v1986_v16 }
 0x16d   : > { %v1682_v35 = vpop.eup %1681  ;;  %1701 = vtanh.f32 %v1131_v17  ;;  %1163 = vst [vmem:[%s2021_s6 + $0x8] sm:$0xff] %v1131_v17  ;;  %v1133_v62 = vadd.f32 %v1125_v48, %v1117_v47  ;;  %v1080_v60 = vadd.f32 1.0, %v1680_v27 }
 0x16e   : > { %v1684_v36 = vpop.eup %1683  ;;  %1703 = vtanh.f32 %v1132_v59  ;;  %1164 = vst [vmem:[%s2021_s6 + $0x10] sm:$0xff] %v1132_v59  ;;  %v1134_v38 = vadd.f32 %v1126_v19, %v1118_v34  ;;  %v1081_v49 = vadd.f32 1.0, %v1682_v35 }
 0x16f   : > { %v1686_v12 = vpop.eup %1685  ;;  %1705 = vtanh.f32 %v1133_v62  ;;  %1165 = vst [vmem:[%s2021_s6 + $0x18] sm:$0xff] %v1133_v62 }
 0x170   : > { %v1688_v40 = vpop.eup %1687  ;;  %1707 = vtanh.f32 %v1134_v38  ;;  %1166 = vst [vmem:[%s2021_s6 + $0x20] sm:$0xff] %v1134_v38 }
 0x171   : > { %v1690_v16 = vpop.eup %1689  ;;  %v1127_v63 = vmul.f32 %v1688_v40, %v1988_v22  ;;  %1709 = vrcp.f32 %v1079_v39  ;;  %v1121_v22 = vmul.f32 %v2023_v29, %v1113_v42 }
 0x172   : > { %v1692_v1 = vpop.eup %1691  ;;  %v1128_v4 = vmul.f32 %v1690_v16, %v1990_v25  ;;  %1711 = vrcp.f32 %v1080_v60 }
 0x173   : > { %v1694_v46 = vpop.eup %1693  ;;  %v1146_v50 = vmul.f32 %v1692_v1, %v1684_v36  ;;  %v1135_v51 = vadd.f32 %v1127_v63, %v1119_v41 }
 0x174   : > { %v1696_v52 = vpop.eup %1695  ;;  %v1136_v53 = vadd.f32 %v1128_v4, %v1120_v44  ;;  %v1129_v54 = vmul.f32 %v1694_v46, %v1993_v18 }
 0x175   : > { %v1698_v55 = vpop.eup %1697  ;;  %1154 = vst [vmem:[%s2048_s9] sm:$0xff] %v1146_v50  ;;  %1713 = vtanh.f32 %v1135_v51  ;;  %1167 = vst [vmem:[%s2021_s6 + $0x28] sm:$0xff] %v1135_v51 }
 0x176   : > { %v1700_v25 = vpop.eup %1699  ;;  %1715 = vtanh.f32 %v1136_v53  ;;  %1168 = vst [vmem:[%s2021_s6 + $0x30] sm:$0xff] %v1136_v53  ;;  %v1137_v56 = vadd.f32 %v1129_v54, %v1121_v22 }
 0x177   : > { %v1702_v28 = vpop.eup %1701  ;;  %1717 = vrcp.f32 %v1081_v49 }
 0x178   : > { %v1704_v57 = vpop.eup %1703  ;;  %v1147_v30 = vmul.f32 %v1702_v28, %v1686_v12  ;;  %1719 = vtanh.f32 %v1137_v56  ;;  %1169 = vst [vmem:[%s2021_s6 + $0x38] sm:$0xff] %v1137_v56 }
 0x179   : > { %v1706_v61 = vpop.eup %1705  ;;  %v1148_v18 = vmul.f32 %v1704_v57, %v1696_v52 }
 0x17a   : > { %v1708_v23 = vpop.eup %1707  ;;  %1155 = vst [vmem:[%s2048_s9 + $0x8] sm:$0xff] %v1147_v30  ;;  %v1149_v31 = vmul.f32 %v1706_v61, %v1698_v55 }
 0x17b   : > { %1156 = vst [vmem:[%s2048_s9 + $0x10] sm:$0xff] %v1148_v18  ;;  %v1150_v0 = vmul.f32 %v1708_v23, %v1700_v25  ;;  %v1710_v26 = vpop.eup %1709 }
 0x17c   : > { %1157 = vst [vmem:[%s2048_s9 + $0x18] sm:$0xff] %v1149_v31  ;;  %v1712_v32 = vpop.eup %1711 }
 0x17d   : > { %1158 = vst [vmem:[%s2048_s9 + $0x20] sm:$0xff] %v1150_v0 }
 0x17f   : > { %v1714_v2 = vpop.eup %1713 }
 0x180   : > { %v1716_v29 = vpop.eup %1715  ;;  %v1151_v33 = vmul.f32 %v1714_v2, %v1710_v26 }
 0x181   : > { %v1718_v3 = vpop.eup %1717  ;;  %v1152_v5 = vmul.f32 %v1716_v29, %v1712_v32 }
 0x182   : > { %v1720_v6 = vpop.eup %1719  ;;  %1159 = vst [vmem:[%s2048_s9 + $0x28] sm:$0xff] %v1151_v33 }
 0x183   : > { %1160 = vst [vmem:[%s2048_s9 + $0x30] sm:$0xff] %v1152_v5  ;;  %v1153_v7 = vmul.f32 %v1720_v6, %v1718_v3 }
 0x185   : > { %1161 = vst [vmem:[%s2048_s9 + $0x38] sm:$0xff] %v1153_v7 }
 0x186 PF: > { %s15_s17 = sadd.s32 1, %s1743_s17   ;;  %s2078_s15 = smov %s1739_s16 }
 0x187   : > { %p12_p5 = scmp.ge.s32.totalorder %s15_s17, 4   ;;  %s2079_s16 = smov %s2081_s18 }
 0x189   :  { %14 = sbr.rel (!%p12_p5) target bundleno = 2 (0x2), region = 77 }

</bundles_post_ra>
